<compile_context>
chip_gen: v6e
topology: v6e:2x2x1
jax: 0.10.0
libtpu: 0.0.40
codegen_flags: <defaults>
</compile_context>

<pallas_src>
import functools

import jax
import jax.numpy as jnp
from jax.experimental import pallas as pl
from jax.experimental.pallas import tpu as pltpu

LANE = 128


def _round_up(n, m):
    return ((n + m - 1) // m) * m


def _pad_to(a, shape):
    pads = [(0, t - s) for s, t in zip(a.shape, shape)]
    return jnp.pad(a, pads)


def ffnn_kernel(x_ref, w1_ref, b1_ref, w2_ref, b2_ref, w3_ref, b3_ref, o_ref):
    # fc1 -> tanh (accumulate in f32, bias add on the f32 accumulator).
    h = jnp.tanh(
        jnp.dot(x_ref[...], w1_ref[...], preferred_element_type=jnp.float32)
        + b1_ref[...]
    )
    # fc2 -> tanh
    h = jnp.tanh(
        jnp.dot(h.astype(w2_ref.dtype), w2_ref[...],
                preferred_element_type=jnp.float32)
        + b2_ref[...]
    )
    # fc3 (no activation), lane-dense store.
    o_ref[...] = (
        jnp.dot(h.astype(w3_ref.dtype), w3_ref[...],
                preferred_element_type=jnp.float32)
        + b3_ref[...]
    ).astype(o_ref.dtype)


def ffnn_pallas(x, w1, b1, w2, b2, w3, b3, *, block_batch=128,
                param_dtype=jnp.float32):
    """Fused 3-layer MLP. x:(B, d_in); w*: (in, out); b*: (1, out)."""
    B, d_in = x.shape
    h1 = w1.shape[1]
    h2 = w2.shape[1]
    d_out = w3.shape[1]

    # Lane-pad every feature dim to 128 and the batch to the tile size.
    d_in_p = _round_up(d_in, LANE)
    h1_p = _round_up(h1, LANE)
    h2_p = _round_up(h2, LANE)
    d_out_p = _round_up(d_out, LANE)
    tb = max(8, _round_up(min(block_batch, _round_up(B, 8)), 8))
    B_p = _round_up(B, tb)

    x_p = _pad_to(x, (B_p, d_in_p)).astype(param_dtype)
    w1_p = _pad_to(w1, (d_in_p, h1_p)).astype(param_dtype)
    w2_p = _pad_to(w2, (h1_p, h2_p)).astype(param_dtype)
    w3_p = _pad_to(w3, (h2_p, d_out_p)).astype(param_dtype)
    # Biases stay f32: added on the f32 accumulator (v5e has no bf16 VPU).
    b1_p = _pad_to(b1, (1, h1_p)).astype(jnp.float32)
    b2_p = _pad_to(b2, (1, h2_p)).astype(jnp.float32)
    b3_p = _pad_to(b3, (1, d_out_p)).astype(jnp.float32)

    grid = (B_p // tb,)

    # Weights / biases: same block index every step -> stay VMEM-resident.
    resident = lambda shape: pl.BlockSpec(shape, lambda i: (0, 0))

    flops = 2 * B_p * (d_in_p * h1_p + h1_p * h2_p + h2_p * d_out_p)
    transcendentals = B_p * (h1_p + h2_p)
    bytes_accessed = (
        x_p.size * x_p.dtype.itemsize
        + sum(a.size * a.dtype.itemsize
              for a in (w1_p, b1_p, w2_p, b2_p, w3_p, b3_p))
        + B_p * d_out_p * 4
    )

    out_p = pl.pallas_call(
        ffnn_kernel,
        out_shape=jax.ShapeDtypeStruct((B_p, d_out_p), jnp.float32),
        grid=grid,
        in_specs=[
            pl.BlockSpec((tb, d_in_p), lambda i: (i, 0)),  # stream activations
            resident(w1_p.shape), resident(b1_p.shape),
            resident(w2_p.shape), resident(b2_p.shape),
            resident(w3_p.shape), resident(b3_p.shape),
        ],
        out_specs=pl.BlockSpec((tb, d_out_p), lambda i: (i, 0)),
        compiler_params=pltpu.CompilerParams(
            dimension_semantics=("parallel",)),
        cost_estimate=pl.CostEstimate(
            flops=flops,
            transcendentals=transcendentals,
            bytes_accessed=bytes_accessed),
    )(x_p, w1_p, b1_p, w2_p, b2_p, w3_p, b3_p)

    # Drop batch / lane padding outside the kernel.
    return out_p[:B, :d_out]


def init_linear(key, fan_in, fan_out):
    """Deterministic PyTorch-style Linear init: U(-1/sqrt(fan_in), 1/sqrt(fan_in))."""
    kw, kb = jax.random.split(key)
    bound = 1.0 / jnp.sqrt(fan_in)
    # Stored as (in, out) for direct x @ W.
    w = jax.random.uniform(kw, (fan_in, fan_out), jnp.float32, -bound, bound)
    b = jax.random.uniform(kb, (1, fan_out), jnp.float32, -bound, bound)
    return w, b


if __name__ == "__main__":
    # Module config: inputs=32, h1=64, h2=48, outputs=24 (h2 is not None branch).
    inputs, h1, h2, outputs = 32, 64, 48, 24
    batch = 256  # amortize the custom-call overhead; 2 grid steps of 128 rows

    key = jax.random.PRNGKey(0)
    kx, k1, k2, k3 = jax.random.split(key, 4)

    x = jax.random.normal(kx, (batch, inputs), jnp.float32)
    w1, b1 = init_linear(k1, inputs, h1)
    w2, b2 = init_linear(k2, h1, h2)
    w3, b3 = init_linear(k3, h2, outputs)

    # Reference in plain JAX (same semantics as the PyTorch forward).
    ref = jnp.tanh(x @ w1 + b1)
    ref = jnp.tanh(ref @ w2 + b2)
    ref = ref @ w3 + b3

    # f32 path — exact check.
    out_f32 = jax.block_until_ready(
        ffnn_pallas(x, w1, b1, w2, b2, w3, b3, block_batch=128,
                    param_dtype=jnp.float32))
    assert out_f32.shape == (batch, outputs)
    assert jnp.allclose(out_f32, ref, atol=1e-5, rtol=1e-5)

    # bf16 weight/activation path (v6e/v7x MXU win) — loose check.
    out_bf16 = jax.block_until_ready(
        ffnn_pallas(x, w1, b1, w2, b2, w3, b3, block_batch=128,
                    param_dtype=jnp.bfloat16))
    assert out_bf16.shape == (batch, outputs)
    assert jnp.allclose(out_bf16, ref, atol=5e-2, rtol=5e-2)

    # TODO(synk): the h2=None (2-layer) branch of the PyTorch module would need
    # a separate 2-matmul kernel; only the 3-layer branch is implemented here.
    print("KERNEL_OK")
</pallas_src>

<mosaic_0001>
module attributes {stable_mosaic.version = 11 : i64} {
  func.func @ffnn_kernel(%arg0: i32, %arg1: memref<128x128xf32, #tpu.memory_space<vmem>>, %arg2: memref<128x128xf32, #tpu.memory_space<vmem>>, %arg3: memref<1x128xf32, #tpu.memory_space<vmem>>, %arg4: memref<128x128xf32, #tpu.memory_space<vmem>>, %arg5: memref<1x128xf32, #tpu.memory_space<vmem>>, %arg6: memref<128x128xf32, #tpu.memory_space<vmem>>, %arg7: memref<1x128xf32, #tpu.memory_space<vmem>>, %arg8: memref<128x128xf32, #tpu.memory_space<vmem>>) attributes {dimension_semantics = [#tpu.dimension_semantics<parallel>], iteration_bounds = array<i64: 2>, scalar_prefetch = 0 : i64, scratch_operands = 0 : i64, tpu.core_type = #tpu.core_type<tc>, window_params = [{transform_indices = @transform_0, window_bounds = array<i64: 128, 128>}, {pipeline_mode = #tpu.pipeline_mode<synchronous>, transform_indices = @transform_1, window_bounds = array<i64: 128, 128>}, {pipeline_mode = #tpu.pipeline_mode<synchronous>, transform_indices = @transform_2, window_bounds = array<i64: 1, 128>}, {pipeline_mode = #tpu.pipeline_mode<synchronous>, transform_indices = @transform_3, window_bounds = array<i64: 128, 128>}, {pipeline_mode = #tpu.pipeline_mode<synchronous>, transform_indices = @transform_4, window_bounds = array<i64: 1, 128>}, {pipeline_mode = #tpu.pipeline_mode<synchronous>, transform_indices = @transform_5, window_bounds = array<i64: 128, 128>}, {pipeline_mode = #tpu.pipeline_mode<synchronous>, transform_indices = @transform_6, window_bounds = array<i64: 1, 128>}, {transform_indices = @transform_7, window_bounds = array<i64: 128, 128>}]} {
    %c0 = arith.constant 0 : index
    %c0_0 = arith.constant 0 : index
    %0 = vector.load %arg1[%c0, %c0_0] : memref<128x128xf32, #tpu.memory_space<vmem>>, vector<128x128xf32>
    %c0_1 = arith.constant 0 : index
    %c0_2 = arith.constant 0 : index
    %1 = vector.load %arg2[%c0_1, %c0_2] : memref<128x128xf32, #tpu.memory_space<vmem>>, vector<128x128xf32>
    %cst = arith.constant dense<0.000000e+00> : vector<128x128xf32>
    %2 = tpu.matmul %0, %1, %cst {dimension_numbers = #tpu.dot_dimension_numbers<[1], [0], [0], [1], [0, 0, 1, 1], [], []>} : vector<128x128xf32>, vector<128x128xf32>, vector<128x128xf32> -> vector<128x128xf32>
    %c0_3 = arith.constant 0 : index
    %c0_4 = arith.constant 0 : index
    %3 = vector.load %arg3[%c0_3, %c0_4] : memref<1x128xf32, #tpu.memory_space<vmem>>, vector<1x128xf32>
    %4 = vector.broadcast %3 : vector<1x128xf32> to vector<128x128xf32>
    %5 = arith.addf %2, %4 : vector<128x128xf32>
    %6 = math.tanh %5 : vector<128x128xf32>
    %c0_5 = arith.constant 0 : index
    %c0_6 = arith.constant 0 : index
    %7 = vector.load %arg4[%c0_5, %c0_6] : memref<128x128xf32, #tpu.memory_space<vmem>>, vector<128x128xf32>
    %cst_7 = arith.constant dense<0.000000e+00> : vector<128x128xf32>
    %8 = tpu.matmul %6, %7, %cst_7 {dimension_numbers = #tpu.dot_dimension_numbers<[1], [0], [0], [1], [0, 0, 1, 1], [], []>} : vector<128x128xf32>, vector<128x128xf32>, vector<128x128xf32> -> vector<128x128xf32>
    %c0_8 = arith.constant 0 : index
    %c0_9 = arith.constant 0 : index
    %9 = vector.load %arg5[%c0_8, %c0_9] : memref<1x128xf32, #tpu.memory_space<vmem>>, vector<1x128xf32>
    %10 = vector.broadcast %9 : vector<1x128xf32> to vector<128x128xf32>
    %11 = arith.addf %8, %10 : vector<128x128xf32>
    %12 = math.tanh %11 : vector<128x128xf32>
    %c0_10 = arith.constant 0 : index
    %c0_11 = arith.constant 0 : index
    %13 = vector.load %arg6[%c0_10, %c0_11] : memref<128x128xf32, #tpu.memory_space<vmem>>, vector<128x128xf32>
    %cst_12 = arith.constant dense<0.000000e+00> : vector<128x128xf32>
    %14 = tpu.matmul %12, %13, %cst_12 {dimension_numbers = #tpu.dot_dimension_numbers<[1], [0], [0], [1], [0, 0, 1, 1], [], []>} : vector<128x128xf32>, vector<128x128xf32>, vector<128x128xf32> -> vector<128x128xf32>
    %c0_13 = arith.constant 0 : index
    %c0_14 = arith.constant 0 : index
    %15 = vector.load %arg7[%c0_13, %c0_14] : memref<1x128xf32, #tpu.memory_space<vmem>>, vector<1x128xf32>
    %16 = vector.broadcast %15 : vector<1x128xf32> to vector<128x128xf32>
    %17 = arith.addf %14, %16 : vector<128x128xf32>
    %c0_15 = arith.constant 0 : index
    %c0_16 = arith.constant 0 : index
    %18 = vector.load %arg8[%c0_15, %c0_16] : memref<128x128xf32, #tpu.memory_space<vmem>>, vector<128x128xf32>
    tpu.vector_store %arg8[%c0_15, %c0_16], %17 {strides = array<i32>} : memref<128x128xf32, #tpu.memory_space<vmem>>, vector<128x128xf32>,
    return
  }
  func.func @transform_0(%arg0: i32) -> (i32, i32) {
    %c0_i32 = arith.constant 0 : i32
    %c0_i32_0 = arith.constant 0 : i32
    return %arg0, %c0_i32 : i32, i32
  }
  func.func @transform_1(%arg0: i32) -> (i32, i32) {
    %c0_i32 = arith.constant 0 : i32
    %c0_i32_0 = arith.constant 0 : i32
    %c0_i32_1 = arith.constant 0 : i32
    return %c0_i32, %c0_i32_0 : i32, i32
  }
  func.func @transform_2(%arg0: i32) -> (i32, i32) {
    %c0_i32 = arith.constant 0 : i32
    %c0_i32_0 = arith.constant 0 : i32
    %c0_i32_1 = arith.constant 0 : i32
    return %c0_i32, %c0_i32_0 : i32, i32
  }
  func.func @transform_3(%arg0: i32) -> (i32, i32) {
    %c0_i32 = arith.constant 0 : i32
    %c0_i32_0 = arith.constant 0 : i32
    %c0_i32_1 = arith.constant 0 : i32
    return %c0_i32, %c0_i32_0 : i32, i32
  }
  func.func @transform_4(%arg0: i32) -> (i32, i32) {
    %c0_i32 = arith.constant 0 : i32
    %c0_i32_0 = arith.constant 0 : i32
    %c0_i32_1 = arith.constant 0 : i32
    return %c0_i32, %c0_i32_0 : i32, i32
  }
  func.func @transform_5(%arg0: i32) -> (i32, i32) {
    %c0_i32 = arith.constant 0 : i32
    %c0_i32_0 = arith.constant 0 : i32
    %c0_i32_1 = arith.constant 0 : i32
    return %c0_i32, %c0_i32_0 : i32, i32
  }
  func.func @transform_6(%arg0: i32) -> (i32, i32) {
    %c0_i32 = arith.constant 0 : i32
    %c0_i32_0 = arith.constant 0 : i32
    %c0_i32_1 = arith.constant 0 : i32
    return %c0_i32, %c0_i32_0 : i32, i32
  }
  func.func @transform_7(%arg0: i32) -> (i32, i32) {
    %c0_i32 = arith.constant 0 : i32
    %c0_i32_0 = arith.constant 0 : i32
    return %arg0, %c0_i32 : i32, i32
  }
}

</mosaic_0001>

<bundles_post_ra>
// kernel: tpu_custom_call.1
= control target key start
LH: loop header
LB: loop body
LE: loop exit
PB: predicated region body
PF: predicated region fallthrough
CT: control target
= control target key end

     0   :  { %s2020_s0 = inlined_call_operand.hbm [shape: f32[256,128], index: 0, kind: input, shape index: {}]   ;;  %s2021_s1 = inlined_call_operand.hbm [shape: f32[128,128], index: 1, kind: input, shape index: {}]   ;;  %s2022_s2 = inlined_call_operand.vmem [shape: f32[1,128], index: 2, kind: input, shape index: {}]   ;;  %s2023_s3 = inlined_call_operand.hbm [shape: f32[128,128], index: 3, kind: input, shape index: {}]   ;;  %s2024_s4 = inlined_call_operand.vmem [shape: f32[1,128], index: 4, kind: input, shape index: {}]   ;;  %s2025_s5 = inlined_call_operand.hbm [shape: f32[128,128], index: 5, kind: input, shape index: {}]   ;;  %s2026_s6 = inlined_call_operand.vmem [shape: f32[1,128], index: 6, kind: input, shape index: {}]   ;;  %s2027_s7 = inlined_call_operand.hbm [shape: f32[256,128], index: 7, kind: output, shape index: {}]  }
   0x1   :  { %2034 = sst [smem:[#allocation15_spill]] %s2021_s1 }
   0x2   :  { %12 = vsyncpa [#allocation3], 0 }
   0x3   :  { %14 = vsyncpa [#allocation3 + $0x1], 0 }
   0x4   :  { %15 = vsyncpa [#allocation6], 0 }
   0x5   :  { %16 = vsyncpa [#allocation9], 0 }
   0x6   :  { %17 = vsyncpa [#allocation4], 0 }
   0x7   :  { %19 = vsyncpa [#allocation4 + $0x1], 0  ;;  %s1722_s24 = smov 0   ;;  %s1724_s25 = smov 0  }
   0x8   :  { %s1726_s26 = smov 0   ;;  %s1728_s27 = smov 0  }
   0x9 LB: > { %s1743_s28 = sadd.s32 4294967295, %s1671_s27   ;;  %s1027_s29 = sadd.s32 4294967294, %s1671_s27   ;;  %s1671_s27 = sphi %s1728_s27, %s2056_s27   ;;  %s1667_s26 = sphi %s1726_s26, %s2055_s26   ;;  %s1663_s25 = sphi %s1724_s25, %s2054_s25   ;;  %s1659_s24 = sphi %s1722_s24, %s2053_s24  }
   0xa   : > { %p45_p0 = scmp.ne.s32.totalorder %s1663_s25, %s1659_s24  ;;  %p2028_p1 = scmp.eq.s32.totalorder %s1743_s28, 0 }
   0xb   : > { %p195_p2 = scmp.eq.s32.totalorder %s1743_s28, 1  ;;  %p201_p3 = scmp.eq.s32.totalorder %s1027_s29, 1 }
   0xc   : > { %p1752_p4 = por %p2028_p1, %p45_p0  ;;  %p1028_p5 = scmp.ge.s32.totalorder %s1671_s27, 1 }
   0xd   : > { %p1757_p6 = por %p201_p3, %p45_p0  ;;  %p208_p7 = scmp.lt.s32.totalorder %s1671_s27, 3 }
   0xe   : > { %s2035_s30 = scalar_select %p1752_p4, 1, 0 }
   0xf   : > { %s2036_s8 = scalar_select %p1757_p6, 1, 0 }
  0x10   : > { %p1762_p8 = pnand %p1028_p5, %p208_p7  ;;  %s1673_s10 = smov [#allocation5]  }
  0x11   : > { %s220_s11 = sshll.u32 %s1673_s10, 4  ;;  %s1674_s13 = smov [#allocation7]   ;;  %s221_s11 = int_to_ptr.vmem [resolvable:$true] %s220_s11 }
  0x12   : > { %s2037_s9 = scalar_select %p1762_p8, 1, 0 }
  0x13   : > { %p1364_p9 = pneg %p1762_p8  ;;  %s236_s14 = sshll.u32 %s1674_s13, 4  ;;  %s237_s14 = int_to_ptr.vmem [resolvable:$true] %s236_s14 }
  0x14   : > { %s1675_s15 = smov [#allocation8]   ;;  %s1504_s17 = scalar_lea.vmem %s221_s11, 2048 }
  0x15   : > { %p1771_p11 = pnand %p1364_p9, %p2028_p1  ;;  %s252_s16 = sshll.u32 %s1675_s15, 4  ;;  %s253_s16 = int_to_ptr.vmem [resolvable:$true] %s252_s16 }
  0x16   : > { %p1505_p13 = scmp.ne.s32.totalorder %s221_s11, %s1504_s17  ;;  %p1512_p5 = scmp.lt.s32.totalorder %s221_s11, %s221_s11 }
  0x17   : > { %p1495_p12 = pneg %p1771_p11  ;;  %p1513_p7 = scmp.lt.s32.totalorder %s1504_s17, %s1504_s17 }
  0x19   : > { %p1507_p0 = pnand %p1505_p13, %p1495_p12  ;;  %p1514_p9 = por %p1513_p7, %p1512_p5 }
  0x1b   : > { %p1508_p3 = pneg %p1507_p0 }
  0x1d   : > { %p1515_p10 = pnand %p1514_p9, %p1508_p3 }
  0x1f   : > { %1518 = shalt.err (!%p1515_p10)
}
  0x20   : > { %s2029_s18 = smov 128   ;;  %s2030_s19 = smov 8  }
  0x21   : > { %s2039_s1 = sld [smem:[#allocation15_spill]]  ;;  %s1530_s22 = scalar_lea.vmem %s237_s14, 2048 }
  0x22   : > { %p1531_p13 = scmp.ne.s32.totalorder %s237_s14, %s1530_s22  ;;  %p1538_p3 = scmp.lt.s32.totalorder %s237_s14, %s237_s14 }
  0x23   : > { %p1539_p10 = scmp.lt.s32.totalorder %s1530_s22, %s1530_s22 }
  0x24   : > { %p1533_p0 = pnand %p1531_p13, %p1495_p12 }
  0x25   : > { %p1540_p7 = por %p1539_p10, %p1538_p3 }
  0x26   : > { %p1534_p5 = pneg %p1533_p0 }
  0x27   : > { %1367 = dma.hbm_to_vmem [thread:$0]  (!%p1771_p11), %s2039_s1, 2048, %s221_s11, [#allocation6], %s2029_s18, %s2029_s18, %s2030_s19  }
  0x28   : > { %p1541_p9 = pnand %p1540_p7, %p1534_p5 }
  0x2a   : > { %1544 = shalt.err (!%p1541_p9)
}
  0x2b   : > { %1370 = dma.hbm_to_vmem [thread:$0]  (!%p1771_p11), %s2023_s3, 2048, %s237_s14, [#allocation6], %s2029_s18, %s2029_s18, %s2030_s19  }
  0x2c   : > { %s1556_s10 = scalar_lea.vmem %s253_s16, 2048  ;;  %p1564_p3 = scmp.lt.s32.totalorder %s253_s16, %s253_s16 }
  0x2d   : > { %p1557_p1 = scmp.ne.s32.totalorder %s253_s16, %s1556_s10  ;;  %p1565_p5 = scmp.lt.s32.totalorder %s1556_s10, %s1556_s10 }
  0x2f   : > { %p1559_p13 = pnand %p1557_p1, %p1495_p12  ;;  %p1566_p10 = por %p1565_p5, %p1564_p3 }
  0x31   : > { %p1560_p0 = pneg %p1559_p13 }
  0x33   : > { %p1567_p7 = pnand %p1566_p10, %p1560_p0 }
  0x35   : > { %1570 = shalt.err (!%p1567_p7)
}
  0x36   : > { %1373 = dma.hbm_to_vmem [thread:$0]  (!%p1771_p11), %s2025_s5, 2048, %s253_s16, [#allocation9], %s2029_s18, %s2029_s18, %s2030_s19  }
  0x37   : > { %s1811_s14 = sadd.s32 1, %s1671_s27   ;;  %s32_s15 = sadd.s32 1, %s1667_s26 }
  0x38   : > { %s29_s12 = ssub.s32 %s1671_s27, %s1811_s14  ;;  %p39_p12 = scmp.ne.s32.totalorder %s1667_s26, %s1663_s25 }
  0x39   : > { %p30_p1 = scmp.eq.s32.totalorder %s29_s12, 0  ;;  %p40_p9 = scmp.eq.s32.totalorder %s1671_s27, 0 }
  0x3a   : > { %p1385_p13 = scmp.lt.s32.totalorder %s1671_s27, 2  ;;  %p1825_p3 = por %p195_p2, %p39_p12 }
  0x3b   : > { %s1821_s17 = scalar_select %p30_p1, %s1667_s26, %s32_s15  }
  0x3c   : > { %p41_p0 = por %p40_p9, %p39_p12  ;;  %s269_s21 = sand.u32 1, %s1667_s26  }
  0x3d   : > { %s2040_s20 = scalar_select %p1825_p3, 1, 0 }
  0x3e   : > { %s1050_s22 = sshll.u32 %s1671_s27, 11  ;;  %s1033_s16 = sshll.u32 %s269_s21, 7 }
  0x3f   : > { %s1834_s10 = scalar_lea.hbm %s2020_s0, %s1050_s22  ;;  %s273_s11 = scalar_lea.vmem [#allocation2], %s1033_s16 }
  0x40   : > { %s280_s13 = sshll.u32 %s273_s11, 4  ;;  %p1836_p11 = pnand %p1385_p13, %p41_p0  ;;  %s1840_s13 = int_to_ptr.vmem [resolvable:$true] %s280_s13 }
  0x41   : > { %s1842_s15 = scalar_lea.sflag [#allocation3], %s269_s21  ;;  %s1571_s18 = scalar_lea.hbm %s1834_s10, 2048 }
  0x42   : > { %p1572_p2 = scmp.ne.s32.totalorder %s1834_s10, %s1571_s18  ;;  %p1573_p5 = pneg %p1836_p11 }
  0x43   : > { %s1576_s16 = scalar_lea.hbm %s2020_s0, 4096  ;;  %p1577_p1 = scmp.lt.s32.totalorder %s1834_s10, %s2020_s0 }
  0x44   : > { %p1574_p10 = pnand %p1573_p5, %p1572_p2  ;;  %p1578_p12 = scmp.lt.s32.totalorder %s1576_s16, %s1571_s18 }
  0x46   : > { %p1575_p7 = pneg %p1574_p10  ;;  %p1579_p9 = por %p1578_p12, %p1577_p1 }
  0x48   : > { %p1580_p13 = pnand %p1579_p9, %p1575_p7 }
  0x4a   : > { %1583 = shalt.err (!%p1580_p13)
}
  0x4b   : > { %s1584_s21 = scalar_lea.vmem %s1840_s13, 2048  ;;  %s1678_s19 = smov [#allocation2]  }
  0x4c   : > { %p1585_p0 = scmp.ne.s32.totalorder %s1840_s13, %s1584_s21  ;;  %s1589_s1 = sshll.u32 %s1678_s19, 4  ;;  %s1590_s1 = int_to_ptr.vmem [resolvable:$false] %s1589_s1 }
  0x4d   : > { %s1591_s22 = scalar_lea.vmem %s1590_s1, 4096  ;;  %p1592_p10 = scmp.lt.s32.totalorder %s1840_s13, %s1590_s1 }
  0x4e   : > { %p1587_p6 = pnand %p1585_p0, %p1573_p5  ;;  %p1593_p3 = scmp.lt.s32.totalorder %s1591_s22, %s1584_s21 }
  0x50   : > { %p1588_p2 = pneg %p1587_p6  ;;  %p1594_p4 = por %p1593_p3, %p1592_p10 }
  0x52   : > { %p1595_p8 = pnand %p1594_p4, %p1588_p2 }
  0x54   : > { %1598 = shalt.err (!%p1595_p8)
}
  0x55   : > { %s2042_s18 = smov 8   ;;  %s2043_s23 = smov 128  }
  0x56   : > { %1377 = dma.hbm_to_vmem [thread:$0]  (!%p1836_p11), %s1834_s10, 2048, %s1840_s13, %s1842_s15, %s2043_s23, %s2043_s23, %s2042_s18  }
  0x57   : > { %p2044_p6 = scmp.ne.s32.totalorder %s2037_s9, 0 }
  0x58   : > { %s1869_s19 = sand.u32 (!%p2044_p6), 1, %s1663_s25   ;;  %p2045_p4 = scmp.ne.s32.totalorder (!%p2044_p6), %s2035_s30, 0 }
  0x59   : > { %292 = sbr.rel (%p2044_p6) target bundleno = 798 (0x31e), region = 48  ;;  %s1037_s1 = sshll.u32 (!%p2044_p6), %s1869_s19, 7 }
  0x5a   : > { %s295_s16 = scalar_lea.sflag (!%p2044_p6), [#allocation3], %s1869_s19  ;;  %s1875_s12 = scalar_lea.vmem (!%p2044_p6), [#allocation2], %s1037_s1 }
  0x5e   : > { %1642 = dma.done.wait (%p2045_p4), %s295_s16, 2048  }
  0x5f   : > { %1644 = vsyncadd (%p2045_p4), %s295_s16, 4294965248  ;;  %p2046_p8 = scmp.eq.s32.totalorder %s1743_s28, 0 }
  0x61   : > { %1646 = dma.done.wait (%p2046_p8), [#allocation6], 4096   ;;  %p2047_p3 = pmov %p2046_p8 }
  0x63   : > { %1648 = vsyncadd (%p2047_p3), [#allocation6], 4294963200  ;;  %p2048_p11 = pmov %p2047_p3 }
  0x64   : > { %p2049_p5 = pmov %p2047_p3 }
  0x65   : > { %1650 = dma.done.wait (%p2048_p11), [#allocation9], 2048  }
  0x66   : > { %1652 = vsyncadd (%p2049_p5), [#allocation9], 4294965248  ;;  %v374_v0 = vld [vmem:[#allocation5 + $0x78] sm:$0xff]  ;;  %v373_v1 = vld [vmem:[#allocation5 + $0x70] sm:$0xff]  ;;  %s1952_s11 = scalar_lea.vmem [#allocation10], %s1037_s1  ;;  %s1051_s21 = sshll.u32 %s1743_s28, 11 }
  0x67   : > { %1148 = vmatprep.subr.mxu0 %v374_v0  ;;  %v372_v2 = vld [vmem:[#allocation5 + $0x68] sm:$0xff]  ;;  %v371_v3 = vld [vmem:[#allocation5 + $0x60] sm:$0xff]  ;;  %v370_v5 = vld [vmem:[#allocation5 + $0x58] sm:$0xff]  ;;  %s925_s22 = sshll.u32 %s1952_s11, 4  ;;  %s1973_s1 = scalar_lea.hbm %s2027_s7, %s1051_s21  ;;  %s1975_s22 = int_to_ptr.vmem [resolvable:$true] %s925_s22 }
  0x68   : > { %1149 = vmatpush3.msra.mxu0 %v374_v0  ;;  %v343_v4 = vld [vmem:[%s1875_s12] sm:$0xff]  ;;  %v369_v6 = vld [vmem:[#allocation5 + $0x50] sm:$0xff]  ;;  %v368_v7 = vld [vmem:[#allocation5 + $0x48] sm:$0xff]  ;;  %s912_s16 = scalar_lea.sflag [#allocation4], %s1869_s19  ;;  %s1599_s28 = scalar_lea.vmem %s1975_s22, 2048 }
  0x69   : > { %1150 = vmatprep.subr.mxu0 %v373_v1  ;;  %1180 = vmatprep.mubr.f32.mxu0 %v343_v4  ;;  %v558_v8 = vld [vmem:[#allocation7 + $0x78] sm:$0xff]  ;;  %v557_v9 = vld [vmem:[#allocation7 + $0x70] sm:$0xff]  ;;  %v367_v10 = vld [vmem:[#allocation5 + $0x40] sm:$0xff]  ;;  %p1600_p7 = scmp.ne.s32.totalorder %s1975_s22, %s1599_s28  ;;  %p2050_p1 = scmp.ne.s32.totalorder %s2040_s20, 0 }
  0x6a   : > { %1151 = vmatpush3.msra.mxu0 %v373_v1  ;;  %1204 = vmatprep.subr.mxu1 %v558_v8  ;;  %v556_v11 = vld [vmem:[#allocation7 + $0x68] sm:$0xff]  ;;  %v366_v12 = vld [vmem:[#allocation5 + $0x38] sm:$0xff]  ;;  %v555_v13 = vld [vmem:[#allocation7 + $0x60] sm:$0xff] }
  0x6b   : > { %1152 = vmatprep.subr.mxu0 %v372_v2  ;;  %1205 = vmatpush3.msra.mxu1 %v558_v8  ;;  %v365_v14 = vld [vmem:[#allocation5 + $0x30] sm:$0xff]  ;;  %v554_v15 = vld [vmem:[#allocation7 + $0x58] sm:$0xff]  ;;  %v364_v16 = vld [vmem:[#allocation5 + $0x28] sm:$0xff]  ;;  %p1601_p12 = pnand %p1600_p7, %p2050_p1 }
  0x6c   : > { %1153 = vmatpush3.msra.mxu0 %v372_v2  ;;  %1206 = vmatprep.subr.mxu1 %v557_v9  ;;  %v553_v17 = vld [vmem:[#allocation7 + $0x50] sm:$0xff]  ;;  %v363_v18 = vld [vmem:[#allocation5 + $0x20] sm:$0xff]  ;;  %v362_v19 = vld [vmem:[#allocation5 + $0x18] sm:$0xff] }
  0x6d   : > { %1154 = vmatprep.subr.mxu0 %v371_v3  ;;  %1207 = vmatpush3.msra.mxu1 %v557_v9  ;;  %v361_v20 = vld [vmem:[#allocation5 + $0x10] sm:$0xff]  ;;  %v360_v21 = vld [vmem:[#allocation5 + $0x8] sm:$0xff]  ;;  %v359_v22 = vld [vmem:[#allocation5] sm:$0xff]  ;;  %p1602_p9 = pneg %p1601_p12 }
  0x6e   : > { %1155 = vmatpush3.msra.mxu0 %v371_v3  ;;  %1208 = vmatprep.subr.mxu1 %v556_v11  ;;  %v344_v23 = vld [vmem:[%s1875_s12 + $0x8] sm:$0xff]  ;;  %v345_v24 = vld [vmem:[%s1875_s12 + $0x10] sm:$0xff]  ;;  %v346_v25 = vld [vmem:[%s1875_s12 + $0x18] sm:$0xff] }
  0x6f   : > { %1156 = vmatprep.subr.mxu0 %v370_v5  ;;  %1209 = vmatpush3.msra.mxu1 %v556_v11  ;;  %v347_v26 = vld [vmem:[%s1875_s12 + $0x20] sm:$0xff]  ;;  %v348_v27 = vld [vmem:[%s1875_s12 + $0x28] sm:$0xff]  ;;  %v349_v28 = vld [vmem:[%s1875_s12 + $0x30] sm:$0xff] }
  0x70   : > { %1157 = vmatpush3.msra.mxu0 %v370_v5  ;;  %1210 = vmatprep.subr.mxu1 %v555_v13  ;;  %v350_v29 = vld [vmem:[%s1875_s12 + $0x38] sm:$0xff]  ;;  %v351_v30 = vld [vmem:[%s1875_s12 + $0x40] sm:$0xff]  ;;  %v352_v31 = vld [vmem:[%s1875_s12 + $0x48] sm:$0xff] }
  0x71   : > { %1158 = vmatprep.subr.mxu0 %v369_v6  ;;  %1211 = vmatpush3.msra.mxu1 %v555_v13  ;;  %v353_v32 = vld [vmem:[%s1875_s12 + $0x50] sm:$0xff]  ;;  %v354_v33 = vld [vmem:[%s1875_s12 + $0x58] sm:$0xff]  ;;  %v355_v34 = vld [vmem:[%s1875_s12 + $0x60] sm:$0xff] }
  0x72   : > { %1159 = vmatpush3.msra.mxu0 %v369_v6  ;;  %1212 = vmatprep.subr.mxu1 %v554_v15  ;;  %v356_v35 = vld [vmem:[%s1875_s12 + $0x68] sm:$0xff]  ;;  %v357_v36 = vld [vmem:[%s1875_s12 + $0x70] sm:$0xff]  ;;  %v358_v37 = vld [vmem:[%s1875_s12 + $0x78] sm:$0xff]  ;;  %s1679_s12 = smov [#allocation10]  }
  0x73   : > { %1160 = vmatprep.subr.mxu0 %v368_v7  ;;  %1213 = vmatpush3.msra.mxu1 %v554_v15  ;;  %v552_v38 = vld [vmem:[#allocation7 + $0x48] sm:$0xff]  ;;  %v551_v39 = vld [vmem:[#allocation7 + $0x40] sm:$0xff]  ;;  %v550_v40 = vld [vmem:[#allocation7 + $0x38] sm:$0xff]  ;;  %s1603_s30 = sshll.u32 %s1679_s12, 4  ;;  %s1604_s30 = int_to_ptr.vmem [resolvable:$false] %s1603_s30 }
  0x74   : > { %1161 = vmatpush3.msra.mxu0 %v368_v7  ;;  %1214 = vmatprep.subr.mxu1 %v553_v17  ;;  %v549_v41 = vld [vmem:[#allocation7 + $0x30] sm:$0xff]  ;;  %v548_v42 = vld [vmem:[#allocation7 + $0x28] sm:$0xff]  ;;  %v547_v43 = vld [vmem:[#allocation7 + $0x20] sm:$0xff]  ;;  %s1605_s9 = scalar_lea.vmem %s1604_s30, 4096  ;;  %p1606_p13 = scmp.lt.s32.totalorder %s1975_s22, %s1604_s30 }
  0x75   : > { %1162 = vmatprep.subr.mxu0 %v367_v10  ;;  %1215 = vmatpush3.msra.mxu1 %v553_v17  ;;  %v546_v44 = vld [vmem:[#allocation7 + $0x18] sm:$0xff]  ;;  %v545_v45 = vld [vmem:[#allocation7 + $0x10] sm:$0xff]  ;;  %v544_v46 = vld [vmem:[#allocation7 + $0x8] sm:$0xff]  ;;  %p1607_p0 = scmp.lt.s32.totalorder %s1605_s9, %s1599_s28 }
  0x76   : > { %1163 = vmatpush3.msra.mxu0 %v367_v10  ;;  %1216 = vmatprep.subr.mxu1 %v552_v38  ;;  %v543_v47 = vld [vmem:[#allocation7] sm:$0xff]  ;;  %v742_v48 = vld [vmem:[#allocation8 + $0x78] sm:$0xff]  ;;  %v741_v49 = vld [vmem:[#allocation8 + $0x70] sm:$0xff] }
  0x77   : > { %1164 = vmatprep.subr.mxu0 %v366_v12  ;;  %1217 = vmatpush3.msra.mxu1 %v552_v38  ;;  %v740_v50 = vld [vmem:[#allocation8 + $0x68] sm:$0xff]  ;;  %v1905_v51 = vld [vmem:[#allocation8 + $0x60] sm:$0xff]  ;;  %v1907_v52 = vld [vmem:[#allocation8 + $0x58] sm:$0xff]  ;;  %p1608_p2 = por %p1607_p0, %p1606_p13 }
  0x78   : > { %1165 = vmatpush3.msra.mxu0 %v366_v12  ;;  %1218 = vmatprep.subr.mxu1 %v551_v39  ;;  %v1911_v53 = vld [vmem:[#allocation8 + $0x50] sm:$0xff]  ;;  %v1920_v54 = vld [vmem:[%s2022_s2] ss:$0 sm:$0xff] }
  0x79   : > { %1166 = vmatprep.subr.mxu0 %v365_v14  ;;  %1219 = vmatpush3.msra.mxu1 %v551_v39  ;;  %v736_v39 = vld [vmem:[#allocation8 + $0x48] sm:$0xff]  ;;  %p1609_p10 = pnand %p1608_p2, %p1602_p9 }
  0x7a   : > { %1167 = vmatpush3.msra.mxu0 %v365_v14  ;;  %1220 = vmatprep.subr.mxu1 %v550_v40 }
  0x7b   : > { %1168 = vmatprep.subr.mxu0 %v364_v16  ;;  %1221 = vmatpush3.msra.mxu1 %v550_v40  ;;  %v735_v40 = vld [vmem:[#allocation8 + $0x40] sm:$0xff] }
  0x7c   : > { %1169 = vmatpush3.msra.mxu0 %v364_v16  ;;  %1222 = vmatprep.subr.mxu1 %v549_v41 }
  0x7d   : > { %1170 = vmatprep.subr.mxu0 %v363_v18  ;;  %1223 = vmatpush3.msra.mxu1 %v549_v41  ;;  %v734_v41 = vld [vmem:[#allocation8 + $0x38] sm:$0xff] }
  0x7e   : > { %1171 = vmatpush3.msra.mxu0 %v363_v18  ;;  %1224 = vmatprep.subr.mxu1 %v548_v42 }
  0x7f   : > { %1172 = vmatprep.subr.mxu0 %v362_v19  ;;  %1225 = vmatpush3.msra.mxu1 %v548_v42  ;;  %v733_v42 = vld [vmem:[#allocation8 + $0x30] sm:$0xff] }
  0x80   : > { %1173 = vmatpush3.msra.mxu0 %v362_v19  ;;  %1226 = vmatprep.subr.mxu1 %v547_v43 }
  0x81   : > { %1174 = vmatprep.subr.mxu0 %v361_v20  ;;  %1227 = vmatpush3.msra.mxu1 %v547_v43  ;;  %v732_v43 = vld [vmem:[#allocation8 + $0x28] sm:$0xff] }
  0x82   : > { %1175 = vmatpush3.msra.mxu0 %v361_v20  ;;  %1228 = vmatprep.subr.mxu1 %v546_v44 }
  0x83   : > { %1176 = vmatprep.subr.mxu0 %v360_v21  ;;  %1229 = vmatpush3.msra.mxu1 %v546_v44  ;;  %v731_v44 = vld [vmem:[#allocation8 + $0x20] sm:$0xff] }
  0x84   : > { %1177 = vmatpush3.msra.mxu0 %v360_v21  ;;  %1230 = vmatprep.subr.mxu1 %v545_v45 }
  0x85   : > { %1178 = vmatprep.subr.mxu0 %v359_v22  ;;  %1231 = vmatpush3.msra.mxu1 %v545_v45  ;;  %v730_v45 = vld [vmem:[#allocation8 + $0x18] sm:$0xff] }
  0x86   : > { %1179 = vmatpush3.msra.mxu0 %v359_v22  ;;  %1232 = vmatprep.subr.mxu1 %v544_v46 }
  0x87   : > { %1181 = vmatmul.mubr.f32.vlgmr.msra.gmra.mxu0 %v344_v23  ;;  %1233 = vmatpush3.msra.mxu1 %v544_v46  ;;  %v729_v46 = vld [vmem:[#allocation8 + $0x10] sm:$0xff] }
  0x88   : > { %1183 = vmatprep.mubr.f32.mxu0 %v345_v24  ;;  %1234 = vmatprep.subr.mxu1 %v543_v47 }
  0x89   : > { %1235 = vmatpush3.msra.mxu1 %v543_v47  ;;  %1260 = vmatprep.subr.mxu0 %v742_v48  ;;  %v728_v47 = vld [vmem:[#allocation8 + $0x8] sm:$0xff] }
  0x8a   : > { %1316 = vmatprep.subr.mxu1 %v742_v48  ;;  %1261 = vmatpush3.msra.mxu0 %v742_v48 }
  0x8b   : > { %1184 = vmatmul.mubr.f32.gmra.mxu0 %v346_v25  ;;  %1262 = vmatprep.subr.mxu0 %v741_v49 }
  0x8c   : > { %1186 = vmatprep.mubr.f32.mxu0 %v347_v26  ;;  %1263 = vmatpush3.msra.mxu0 %v741_v49 }
  0x8d   : > { %1264 = vmatprep.subr.mxu0 %v740_v50 }
  0x8e   : > { %1265 = vmatpush3.msra.mxu0 %v740_v50 }
  0x8f   : > { %1187 = vmatmul.mubr.f32.gmra.mxu0 %v348_v27  ;;  %1266 = vmatprep.subr.mxu0 %v1905_v51 }
  0x90   : > { %1189 = vmatprep.mubr.f32.mxu0 %v349_v28  ;;  %1267 = vmatpush3.msra.mxu0 %v1905_v51 }
  0x91   : > { %1268 = vmatprep.subr.mxu0 %v1907_v52 }
  0x92   : > { %1269 = vmatpush3.msra.mxu0 %v1907_v52 }
  0x93   : > { %1190 = vmatmul.mubr.f32.gmra.mxu0 %v350_v29  ;;  %1270 = vmatprep.subr.mxu0 %v1911_v53 }
  0x94   : > { %1192 = vmatprep.mubr.f32.mxu0 %v351_v30  ;;  %1271 = vmatpush3.msra.mxu0 %v1911_v53 }
  0x95   : > { %1272 = vmatprep.subr.mxu0 %v736_v39 }
  0x96   : > { %1273 = vmatpush3.msra.mxu0 %v736_v39 }
  0x97   : > { %1193 = vmatmul.mubr.f32.gmra.mxu0 %v352_v31  ;;  %1274 = vmatprep.subr.mxu0 %v735_v40 }
  0x98   : > { %1195 = vmatprep.mubr.f32.mxu0 %v353_v32  ;;  %1275 = vmatpush3.msra.mxu0 %v735_v40 }
  0x99   : > { %1276 = vmatprep.subr.mxu0 %v734_v41 }
  0x9a   : > { %1277 = vmatpush3.msra.mxu0 %v734_v41 }
  0x9b   : > { %1196 = vmatmul.mubr.f32.gmra.mxu0 %v354_v33  ;;  %1278 = vmatprep.subr.mxu0 %v733_v42 }
  0x9c   : > { %1198 = vmatprep.mubr.f32.mxu0 %v355_v34  ;;  %1279 = vmatpush3.msra.mxu0 %v733_v42 }
  0x9d   : > { %1280 = vmatprep.subr.mxu0 %v732_v43 }
  0x9e   : > { %1281 = vmatpush3.msra.mxu0 %v732_v43 }
  0x9f   : > { %1199 = vmatmul.mubr.f32.gmra.mxu0 %v356_v35  ;;  %1282 = vmatprep.subr.mxu0 %v731_v44 }
  0xa0   : > { %1201 = vmatprep.mubr.f32.mxu0 %v357_v36  ;;  %1283 = vmatpush3.msra.mxu0 %v731_v44 }
  0xa1   : > { %1284 = vmatprep.subr.mxu0 %v730_v45 }
  0xa2   : > { %1285 = vmatpush3.msra.mxu0 %v730_v45 }
  0xa3   : > { %1202 = vmatmul.mubr.f32.gmra.mxu0 %v358_v37  ;;  %1286 = vmatprep.subr.mxu0 %v729_v46 }
  0xa4   : > { %1287 = vmatpush3.msra.mxu0 %v729_v46 }
  0xa5   : > { %1288 = vmatprep.subr.mxu0 %v728_v47 }
  0xa6   : > { %1289 = vmatpush3.msra.mxu0 %v728_v47 }
 0x147   : > { %v1182_v55 = vpop.f32.mrf.mxu0 }
 0x148   : > { %v454_v56 = vadd.f32 %v1182_v55, %v1920_v54 }
 0x149   : > { %v448_v57 = vpop.f32.mrf.mxu0 }
 0x14a   : > { %v449_v58 = vadd.f32 %v1920_v54, %v448_v57 }
 0x14b   : > { %v1185_v59 = vpop.f32.mrf.mxu0 }
 0x14c   : > { %1429 = vtanh.f32 %v449_v58  ;;  %v464_v60 = vadd.f32 %v1185_v59, %v1920_v54 }
 0x14d   : > { %1431 = vtanh.f32 %v454_v56  ;;  %v458_v61 = vpop.f32.mrf.mxu0 }
 0x14e   : > { %v459_v62 = vadd.f32 %v1920_v54, %v458_v61 }
 0x14f   : > { %v1188_v63 = vpop.f32.mrf.mxu0 }
 0x150   : > { %1433 = vtanh.f32 %v459_v62  ;;  %v474_v0 = vadd.f32 %v1188_v63, %v1920_v54 }
 0x151   : > { %1435 = vtanh.f32 %v464_v60  ;;  %v468_v1 = vpop.f32.mrf.mxu0 }
 0x152   : > { %v469_v2 = vadd.f32 %v1920_v54, %v468_v1 }
 0x153   : > { %v1191_v3 = vpop.f32.mrf.mxu0 }
 0x154   : > { %1437 = vtanh.f32 %v469_v2  ;;  %v484_v4 = vadd.f32 %v1191_v3, %v1920_v54 }
 0x155   : > { %1439 = vtanh.f32 %v474_v0  ;;  %v478_v5 = vpop.f32.mrf.mxu0 }
 0x156   : > { %v479_v6 = vadd.f32 %v1920_v54, %v478_v5 }
 0x157   : > { %v1194_v7 = vpop.f32.mrf.mxu0 }
 0x158   : > { %1441 = vtanh.f32 %v479_v6  ;;  %v494_v9 = vadd.f32 %v1194_v7, %v1920_v54 }
 0x159   : > { %v1430_v8 = vpop.eup %1429  ;;  %1443 = vtanh.f32 %v484_v4  ;;  %v488_v10 = vpop.f32.mrf.mxu0 }
 0x15a   : > { %v1432_v11 = vpop.eup %1431  ;;  %v489_v12 = vadd.f32 %v1920_v54, %v488_v10  ;;  %1236 = vmatprep.mubr.f32.mxu1 %v1430_v8 }
 0x15b   : > { %v1197_v13 = vpop.f32.mrf.mxu0  ;;  %1237 = vmatmul.mubr.f32.vlgmr.msra.gmra.mxu1 %v1432_v11 }
 0x15c   : > { %1445 = vtanh.f32 %v489_v12  ;;  %1332 = vmatpush3.msra.mxu1 %v742_v48  ;;  %v504_v15 = vadd.f32 %v1197_v13, %v1920_v54  ;;  %v727_v48 = vld [vmem:[#allocation8] sm:$0xff] }
 0x15d   : > { %v1434_v14 = vpop.eup %1433  ;;  %1447 = vtanh.f32 %v494_v9  ;;  %v498_v16 = vpop.f32.mrf.mxu0  ;;  %1317 = vmatprep.subr.mxu1 %v741_v49  ;;  %1290 = vmatprep.subr.mxu0 %v727_v48 }
 0x15e   : > { %v1436_v17 = vpop.eup %1435  ;;  %v499_v18 = vadd.f32 %v1920_v54, %v498_v16  ;;  %1239 = vmatprep.mubr.f32.mxu1 %v1434_v14  ;;  %1333 = vmatpush3.msra.mxu1 %v741_v49  ;;  %v1043_v49 = vld [vmem:[%s2024_s4] ss:$0 sm:$0xff] }
 0x15f   : > { %v1200_v19 = vpop.f32.mrf.mxu0  ;;  %1240 = vmatmul.mubr.f32.gmra.mxu1 %v1436_v17  ;;  %1318 = vmatprep.subr.mxu1 %v740_v50 }
 0x160   : > { %1449 = vtanh.f32 %v499_v18  ;;  %1334 = vmatpush3.msra.mxu1 %v740_v50  ;;  %v514_v21 = vadd.f32 %v1200_v19, %v1920_v54  ;;  %1291 = vmatpush3.msra.mxu0 %v727_v48 }
 0x161   : > { %v1438_v20 = vpop.eup %1437  ;;  %1451 = vtanh.f32 %v504_v15  ;;  %v508_v22 = vpop.f32.mrf.mxu0  ;;  %1319 = vmatprep.subr.mxu1 %v1905_v51 }
 0x162   : > { %v1440_v23 = vpop.eup %1439  ;;  %v509_v24 = vadd.f32 %v1920_v54, %v508_v22  ;;  %1242 = vmatprep.mubr.f32.mxu1 %v1438_v20  ;;  %1335 = vmatpush3.msra.mxu1 %v1905_v51 }
 0x163   : > { %v1203_v25 = vpop.f32.mrf.mxu0  ;;  %1243 = vmatmul.mubr.f32.gmra.mxu1 %v1440_v23  ;;  %1320 = vmatprep.subr.mxu1 %v1907_v52 }
 0x164   : > { %1453 = vtanh.f32 %v509_v24  ;;  %1336 = vmatpush3.msra.mxu1 %v1907_v52  ;;  %v524_v27 = vadd.f32 %v1203_v25, %v1920_v54 }
 0x165   : > { %v1442_v26 = vpop.eup %1441  ;;  %1455 = vtanh.f32 %v514_v21  ;;  %v518_v28 = vpop.f32.mrf.mxu0  ;;  %1321 = vmatprep.subr.mxu1 %v1911_v53 }
 0x166   : > { %v1444_v29 = vpop.eup %1443  ;;  %v519_v30 = vadd.f32 %v1920_v54, %v518_v28  ;;  %1245 = vmatprep.mubr.f32.mxu1 %v1442_v26  ;;  %1337 = vmatpush3.msra.mxu1 %v1911_v53 }
 0x167   : > { %1246 = vmatmul.mubr.f32.gmra.mxu1 %v1444_v29  ;;  %1322 = vmatprep.subr.mxu1 %v736_v39 }
 0x168   : > { %1457 = vtanh.f32 %v519_v30  ;;  %1338 = vmatpush3.msra.mxu1 %v736_v39 }
 0x169   : > { %v1446_v31 = vpop.eup %1445  ;;  %1459 = vtanh.f32 %v524_v27  ;;  %1323 = vmatprep.subr.mxu1 %v735_v40 }
 0x16a   : > { %v1448_v32 = vpop.eup %1447  ;;  %1248 = vmatprep.mubr.f32.mxu1 %v1446_v31  ;;  %1339 = vmatpush3.msra.mxu1 %v735_v40 }
 0x16b   : > { %1249 = vmatmul.mubr.f32.gmra.mxu1 %v1448_v32  ;;  %1324 = vmatprep.subr.mxu1 %v734_v41 }
 0x16c   : > { %1340 = vmatpush3.msra.mxu1 %v734_v41 }
 0x16d   : > { %v1450_v33 = vpop.eup %1449  ;;  %1325 = vmatprep.subr.mxu1 %v733_v42 }
 0x16e   : > { %v1452_v34 = vpop.eup %1451  ;;  %1251 = vmatprep.mubr.f32.mxu1 %v1450_v33  ;;  %1341 = vmatpush3.msra.mxu1 %v733_v42 }
 0x16f   : > { %1252 = vmatmul.mubr.f32.gmra.mxu1 %v1452_v34  ;;  %1326 = vmatprep.subr.mxu1 %v732_v43  ;;  %v1044_v34 = vld [vmem:[%s2026_s6] ss:$0 sm:$0xff] }
 0x170   : > { %1342 = vmatpush3.msra.mxu1 %v732_v43 }
 0x171   : > { %v1454_v35 = vpop.eup %1453  ;;  %1327 = vmatprep.subr.mxu1 %v731_v44 }
 0x172   : > { %v1456_v36 = vpop.eup %1455  ;;  %1254 = vmatprep.mubr.f32.mxu1 %v1454_v35  ;;  %1343 = vmatpush3.msra.mxu1 %v731_v44 }
 0x173   : > { %1255 = vmatmul.mubr.f32.gmra.mxu1 %v1456_v36  ;;  %1328 = vmatprep.subr.mxu1 %v730_v45 }
 0x174   : > { %1344 = vmatpush3.msra.mxu1 %v730_v45 }
 0x175   : > { %v1458_v37 = vpop.eup %1457  ;;  %1329 = vmatprep.subr.mxu1 %v729_v46 }
 0x176   : > { %v1460_v38 = vpop.eup %1459  ;;  %1257 = vmatprep.mubr.f32.mxu1 %v1458_v37  ;;  %1345 = vmatpush3.msra.mxu1 %v729_v46 }
 0x177   : > { %1258 = vmatmul.mubr.f32.gmra.mxu1 %v1460_v38  ;;  %1330 = vmatprep.subr.mxu1 %v728_v47 }
 0x178   : > { %1346 = vmatpush3.msra.mxu1 %v728_v47 }
 0x179   : > { %1331 = vmatprep.subr.mxu1 %v727_v48 }
 0x17a   : > { %1347 = vmatpush3.msra.mxu1 %v727_v48 }
 0x21b   : > { %v1238_v50 = vpop.f32.mrf.mxu1 }
 0x21c   : > { %v638_v51 = vadd.f32 %v1238_v50, %v1043_v49 }
 0x21d   : > { %v632_v52 = vpop.f32.mrf.mxu1 }
 0x21e   : > { %v633_v53 = vadd.f32 %v1043_v49, %v632_v52 }
 0x21f   : > { %v1241_v54 = vpop.f32.mrf.mxu1 }
 0x220   : > { %1461 = vtanh.f32 %v633_v53  ;;  %v648_v55 = vadd.f32 %v1241_v54, %v1043_v49 }
 0x221   : > { %1463 = vtanh.f32 %v638_v51  ;;  %v642_v56 = vpop.f32.mrf.mxu1 }
 0x222   : > { %v643_v57 = vadd.f32 %v1043_v49, %v642_v56 }
 0x223   : > { %v1244_v58 = vpop.f32.mrf.mxu1 }
 0x224   : > { %1465 = vtanh.f32 %v643_v57  ;;  %v658_v59 = vadd.f32 %v1244_v58, %v1043_v49 }
 0x225   : > { %1467 = vtanh.f32 %v648_v55  ;;  %v652_v60 = vpop.f32.mrf.mxu1 }
 0x226   : > { %v653_v61 = vadd.f32 %v1043_v49, %v652_v60 }
 0x227   : > { %v1247_v62 = vpop.f32.mrf.mxu1 }
 0x228   : > { %1469 = vtanh.f32 %v653_v61  ;;  %v668_v63 = vadd.f32 %v1247_v62, %v1043_v49 }
 0x229   : > { %1471 = vtanh.f32 %v658_v59  ;;  %v662_v0 = vpop.f32.mrf.mxu1 }
 0x22a   : > { %v663_v1 = vadd.f32 %v1043_v49, %v662_v0 }
 0x22b   : > { %v1250_v2 = vpop.f32.mrf.mxu1 }
 0x22c   : > { %1473 = vtanh.f32 %v663_v1  ;;  %v678_v4 = vadd.f32 %v1250_v2, %v1043_v49 }
 0x22d   : > { %v1462_v3 = vpop.eup %1461  ;;  %1475 = vtanh.f32 %v668_v63  ;;  %v672_v5 = vpop.f32.mrf.mxu1 }
 0x22e   : > { %v1464_v6 = vpop.eup %1463  ;;  %v673_v7 = vadd.f32 %v1043_v49, %v672_v5  ;;  %1292 = vmatprep.mubr.f32.mxu0 %v1462_v3 }
 0x22f   : > { %v1253_v8 = vpop.f32.mrf.mxu1  ;;  %1293 = vmatmul.mubr.f32.vlgmr.msra.gmra.mxu0 %v1464_v6 }
 0x230   : > { %1477 = vtanh.f32 %v673_v7  ;;  %v688_v10 = vadd.f32 %v1253_v8, %v1043_v49 }
 0x231   : > { %v1466_v9 = vpop.eup %1465  ;;  %1479 = vtanh.f32 %v678_v4  ;;  %v682_v11 = vpop.f32.mrf.mxu1 }
 0x232   : > { %v1468_v12 = vpop.eup %1467  ;;  %v683_v13 = vadd.f32 %v1043_v49, %v682_v11  ;;  %1295 = vmatprep.mubr.f32.mxu0 %v1466_v9 }
 0x233   : > { %v1256_v14 = vpop.f32.mrf.mxu1  ;;  %1296 = vmatmul.mubr.f32.gmra.mxu0 %v1468_v12 }
 0x234   : > { %1481 = vtanh.f32 %v683_v13  ;;  %v698_v16 = vadd.f32 %v1256_v14, %v1043_v49 }
 0x235   : > { %v1470_v15 = vpop.eup %1469  ;;  %1483 = vtanh.f32 %v688_v10  ;;  %v692_v17 = vpop.f32.mrf.mxu1 }
 0x236   : > { %v1472_v18 = vpop.eup %1471  ;;  %v693_v19 = vadd.f32 %v1043_v49, %v692_v17  ;;  %1298 = vmatprep.mubr.f32.mxu0 %v1470_v15 }
 0x237   : > { %v1259_v20 = vpop.f32.mrf.mxu1  ;;  %1299 = vmatmul.mubr.f32.gmra.mxu0 %v1472_v18 }
 0x238   : > { %1485 = vtanh.f32 %v693_v19  ;;  %v708_v22 = vadd.f32 %v1259_v20, %v1043_v49 }
 0x239   : > { %v1474_v21 = vpop.eup %1473  ;;  %1487 = vtanh.f32 %v698_v16  ;;  %v702_v23 = vpop.f32.mrf.mxu1 }
 0x23a   : > { %v1476_v24 = vpop.eup %1475  ;;  %v703_v25 = vadd.f32 %v1043_v49, %v702_v23  ;;  %1301 = vmatprep.mubr.f32.mxu0 %v1474_v21 }
 0x23b   : > { %1302 = vmatmul.mubr.f32.gmra.mxu0 %v1476_v24 }
 0x23c   : > { %1489 = vtanh.f32 %v703_v25 }
 0x23d   : > { %v1478_v26 = vpop.eup %1477  ;;  %1491 = vtanh.f32 %v708_v22 }
 0x23e   : > { %v1480_v27 = vpop.eup %1479  ;;  %1304 = vmatprep.mubr.f32.mxu1 %v1478_v26 }
 0x23f   : > { %1305 = vmatmul.mubr.f32.vlgmr.msra.gmra.mxu1 %v1480_v27 }
 0x241   : > { %v1482_v28 = vpop.eup %1481 }
 0x242   : > { %v1484_v29 = vpop.eup %1483  ;;  %1307 = vmatprep.mubr.f32.mxu1 %v1482_v28 }
 0x243   : > { %1308 = vmatmul.mubr.f32.gmra.mxu1 %v1484_v29 }
 0x245   : > { %v1486_v30 = vpop.eup %1485 }
 0x246   : > { %v1488_v31 = vpop.eup %1487  ;;  %1310 = vmatprep.mubr.f32.mxu1 %v1486_v30 }
 0x247   : > { %1311 = vmatmul.mubr.f32.gmra.mxu1 %v1488_v31 }
 0x249   : > { %v1490_v32 = vpop.eup %1489 }
 0x24a   : > { %v1492_v33 = vpop.eup %1491  ;;  %1313 = vmatprep.mubr.f32.mxu1 %v1490_v32 }
 0x24b   : > { %1314 = vmatmul.mubr.f32.gmra.mxu1 %v1492_v33 }
 0x2ef   : > { %v1294_v35 = vpop.f32.mrf.mxu0 }
 0x2f0   : > { %v822_v36 = vadd.f32 %v1294_v35, %v1044_v34 }
 0x2f1   : > { %v816_v37 = vpop.f32.mrf.mxu0 }
 0x2f2   : > { %896 = vst [vmem:[%s1952_s11 + $0x8] sm:$0xff] %v822_v36  ;;  %v817_v38 = vadd.f32 %v1044_v34, %v816_v37 }
 0x2f3   : > { %v1297_v39 = vpop.f32.mrf.mxu0 }
 0x2f4   : > { %895 = vst [vmem:[%s1952_s11] sm:$0xff] %v817_v38  ;;  %v832_v40 = vadd.f32 %v1297_v39, %v1044_v34 }
 0x2f5   : > { %v826_v41 = vpop.f32.mrf.mxu0 }
 0x2f6   : > { %898 = vst [vmem:[%s1952_s11 + $0x18] sm:$0xff] %v832_v40  ;;  %v827_v42 = vadd.f32 %v1044_v34, %v826_v41 }
 0x2f7   : > { %v1300_v43 = vpop.f32.mrf.mxu0 }
 0x2f8   : > { %897 = vst [vmem:[%s1952_s11 + $0x10] sm:$0xff] %v827_v42  ;;  %v842_v44 = vadd.f32 %v1300_v43, %v1044_v34 }
 0x2f9   : > { %v836_v45 = vpop.f32.mrf.mxu0 }
 0x2fa   : > { %900 = vst [vmem:[%s1952_s11 + $0x28] sm:$0xff] %v842_v44  ;;  %v837_v46 = vadd.f32 %v1044_v34, %v836_v45 }
 0x2fb   : > { %v1303_v47 = vpop.f32.mrf.mxu0 }
 0x2fc   : > { %899 = vst [vmem:[%s1952_s11 + $0x20] sm:$0xff] %v837_v46  ;;  %v852_v48 = vadd.f32 %v1303_v47, %v1044_v34 }
 0x2fd   : > { %v846_v49 = vpop.f32.mrf.mxu0 }
 0x2fe   : > { %902 = vst [vmem:[%s1952_s11 + $0x38] sm:$0xff] %v852_v48  ;;  %v847_v50 = vadd.f32 %v1044_v34, %v846_v49 }
 0x2ff   : > { %v1306_v51 = vpop.f32.mrf.mxu1 }
 0x300   : > { %901 = vst [vmem:[%s1952_s11 + $0x30] sm:$0xff] %v847_v50  ;;  %v862_v52 = vadd.f32 %v1306_v51, %v1044_v34 }
 0x301   : > { %v856_v53 = vpop.f32.mrf.mxu1 }
 0x302   : > { %904 = vst [vmem:[%s1952_s11 + $0x48] sm:$0xff] %v862_v52  ;;  %v857_v54 = vadd.f32 %v1044_v34, %v856_v53 }
 0x303   : > { %v1309_v55 = vpop.f32.mrf.mxu1 }
 0x304   : > { %903 = vst [vmem:[%s1952_s11 + $0x40] sm:$0xff] %v857_v54  ;;  %v872_v56 = vadd.f32 %v1309_v55, %v1044_v34 }
 0x305   : > { %v866_v57 = vpop.f32.mrf.mxu1 }
 0x306   : > { %906 = vst [vmem:[%s1952_s11 + $0x58] sm:$0xff] %v872_v56  ;;  %v867_v58 = vadd.f32 %v1044_v34, %v866_v57 }
 0x307   : > { %v1312_v59 = vpop.f32.mrf.mxu1 }
 0x308   : > { %905 = vst [vmem:[%s1952_s11 + $0x50] sm:$0xff] %v867_v58  ;;  %v882_v60 = vadd.f32 %v1312_v59, %v1044_v34 }
 0x309   : > { %v876_v61 = vpop.f32.mrf.mxu1 }
 0x30a   : > { %908 = vst [vmem:[%s1952_s11 + $0x68] sm:$0xff] %v882_v60  ;;  %v877_v62 = vadd.f32 %v1044_v34, %v876_v61 }
 0x30b   : > { %v1315_v63 = vpop.f32.mrf.mxu1 }
 0x30c   : > { %907 = vst [vmem:[%s1952_s11 + $0x60] sm:$0xff] %v877_v62  ;;  %v892_v0 = vadd.f32 %v1315_v63, %v1044_v34 }
 0x30d   : > { %v886_v1 = vpop.f32.mrf.mxu1 }
 0x30e   : > { %910 = vst [vmem:[%s1952_s11 + $0x78] sm:$0xff] %v892_v0  ;;  %v887_v2 = vadd.f32 %v1044_v34, %v886_v1 }
 0x310   : > { %909 = vst [vmem:[%s1952_s11 + $0x70] sm:$0xff] %v887_v2 }
 0x311   : > { %1612 = shalt.err (!%p1609_p10)
}
 0x312   : > { %s1613_s10 = scalar_lea.hbm %s1973_s1, 2048  ;;  %s1617_s29 = scalar_lea.hbm %s2027_s7, 4096 }
 0x313   : > { %p1614_p6 = scmp.ne.s32.totalorder %s1973_s1, %s1613_s10  ;;  %p1618_p3 = scmp.lt.s32.totalorder %s1973_s1, %s2027_s7 }
 0x314   : > { %p1619_p11 = scmp.lt.s32.totalorder %s1617_s29, %s1613_s10 }
 0x315   : > { %p1615_p4 = pnand %p1614_p6, %p2050_p1 }
 0x316   : > { %p1620_p5 = por %p1619_p11, %p1618_p3 }
 0x317   : > { %p1616_p8 = pneg %p1615_p4 }
 0x319   : > { %p1621_p7 = pnand %p1620_p5, %p1616_p8 }
 0x31b   : > { %1624 = shalt.err (!%p1621_p7)
}
 0x31c   : > { %s1680_s18 = smov 128   ;;  %s1681_s23 = smov 8  }
 0x31d   : > { %1362 = dma.vmem_to_hbm [thread:$0]  (%p2050_p1), %s1975_s22, 2048, %s1973_s1, %s912_s16, %s1680_s18, %s1680_s18, %s1681_s23  }
 0x31e PF: > { %s940_s28 = sand.u32 1, %s1659_s24   ;;  %p2051_p12 = scmp.ne.s32.totalorder %s2036_s8, 0 }
 0x31f   : > { %p2052_p9 = scmp.ge.s32.totalorder %s1671_s27, 2  ;;  %s941_s12 = scalar_lea.sflag [#allocation4], %s940_s28 }
 0x321   : > { %p1379_p13 = pnand %p2052_p9, %p2051_p12 }
 0x323   : > { %p1380_p0 = pneg %p1379_p13 }
 0x325   : > { %1654 = dma.done.wait (%p1380_p0), %s941_s12, 2048  }
 0x326   : > { %1656 = vsyncadd (%p1380_p0), %s941_s12, 4294965248  ;;  %p22_p2 = scmp.ge.s32.totalorder %s1811_s14, 4   ;;  %s2053_s24 = smov %s1663_s25 }
 0x327   : > { %s2054_s25 = smov %s1667_s26  ;;  %s2055_s26 = smov %s1821_s17 }
 0x328   : > { %s2056_s27 = smov %s1811_s14  ;;  %24 = sbr.rel (!%p22_p2) target bundleno = 9 (0x9), region = 105 }
 0x32d   :  { %946 = vsyncpa [#allocation3], 1 }
 0x32e   :  { %948 = vsyncpa [#allocation3 + $0x1], 1 }
 0x32f   :  { %949 = vsyncpa [#allocation6], 1 }
 0x330   :  { %950 = vsyncpa [#allocation9], 1 }
 0x331   :  { %951 = vsyncpa [#allocation4], 1 }
 0x332   :  { %953 = vsyncpa [#allocation4 + $0x1], 1 }

</bundles_post_ra>
